<compile_context>
chip_gen: v7x
topology: tpu7x:2x2x1
jax: 0.10.0
libtpu: 0.0.40
codegen_flags: <defaults>
</compile_context>

<pallas_src>
import math

import jax
import jax.numpy as jnp
from jax.experimental import pallas as pl
from jax.experimental.pallas import tpu as pltpu


def _gelu_tanh(x):
    # tanh-approximate GELU (HF "gelu_new" / torch.nn.GELU(approximate="tanh")).
    # tanh lowers to the EUP, which has its own VLIW slot.
    # TODO(synk): exact erf-based GELU if config.hidden_act == "gelu" must be
    #             matched bit-for-bit (erf has no guaranteed Mosaic lowering).
    c = math.sqrt(2.0 / math.pi)
    return 0.5 * x * (1.0 + jnp.tanh(c * (x + 0.044715 * (x * x * x))))


# ----------------------------------------------------------------------------
# Kernels
# ----------------------------------------------------------------------------
def _kernel_single_k(x_ref, w_ref, b_ref, o_ref):
    # Whole reduction dim fits one tile: no scratch accumulator needed.
    y = jnp.dot(x_ref[...], w_ref[...], preferred_element_type=jnp.float32)
    y = y + b_ref[...].astype(jnp.float32)
    o_ref[...] = _gelu_tanh(y).astype(o_ref.dtype)


def _kernel_multi_k(x_ref, w_ref, b_ref, o_ref, acc_ref):
    # x_ref  : (bm, bk)  native dtype (e.g. bf16)
    # w_ref  : (bk, bn)  native dtype
    # b_ref  : (1,  bn)
    # o_ref  : (bm, bn)  output tile (lane-dense when bn is a multiple of 128)
    # acc_ref: (bm, bn)  f32 accumulator, resident across the K grid axis
    k = pl.program_id(2)
    prod = jnp.dot(x_ref[...], w_ref[...], preferred_element_type=jnp.float32)

    @pl.when(k == 0)
    def _():
        acc_ref[...] = prod          # first step: write (skip zero-init pass)

    @pl.when(k > 0)
    def _():
        acc_ref[...] += prod

    @pl.when(k == pl.num_programs(2) - 1)
    def _():
        y = acc_ref[...] + b_ref[...].astype(jnp.float32)
        o_ref[...] = _gelu_tanh(y).astype(o_ref.dtype)


# ----------------------------------------------------------------------------
# Wrapper
# ----------------------------------------------------------------------------
def _pick_tile(dim, want, step):
    """Largest tile <= `want` that divides `dim`; prefers multiples of `step`."""
    if dim <= want:
        return dim
    t = (want // step) * step
    while t >= step:
        if dim % t == 0:
            return t
        t -= step
    return dim  # fallback: no tiling along this dim


def bert_intermediate(hidden_states, w, b, *, bm=256, bn=512, bk=512):
    """BertIntermediate forward.

    hidden_states: (B, S, H)
    w            : (H, I)   dense weight in (in, out) layout (= PyTorch weight.T)
    b            : (I,)     dense bias
    returns      : (B, S, I) = GELU(hidden_states @ w + b)
    """
    B, S, H = hidden_states.shape
    I = w.shape[1]
    assert w.shape == (H, I) and b.shape == (I,)

    M = B * S
    x2d = hidden_states.reshape(M, H)   # contiguous view — no transpose pass
    b2d = b.reshape(1, I)

    bm = _pick_tile(M, bm, 8)
    bn = _pick_tile(I, bn, 128)
    bk = _pick_tile(H, bk, 128)

    nk = H // bk
    out_dtype = hidden_states.dtype

    if nk == 1:
        grid = (M // bm, I // bn)
        out2d = pl.pallas_call(
            _kernel_single_k,
            out_shape=jax.ShapeDtypeStruct((M, I), out_dtype),
            grid_spec=pltpu.PrefetchScalarGridSpec(
                num_scalar_prefetch=0,
                grid=grid,
                in_specs=[
                    pl.BlockSpec((bm, bk), lambda i, j: (i, 0)),   # activations
                    pl.BlockSpec((bk, bn), lambda i, j: (0, j)),   # weights
                    pl.BlockSpec((1, bn), lambda i, j: (0, j)),    # bias
                ],
                out_specs=pl.BlockSpec((bm, bn), lambda i, j: (i, j)),
            ),
            compiler_params=pltpu.CompilerParams(
                dimension_semantics=("parallel", "parallel")),
        )(x2d, w, b2d)
    else:
        grid = (M // bm, I // bn, nk)
        out2d = pl.pallas_call(
            _kernel_multi_k,
            out_shape=jax.ShapeDtypeStruct((M, I), out_dtype),
            grid_spec=pltpu.PrefetchScalarGridSpec(
                num_scalar_prefetch=0,
                grid=grid,
                in_specs=[
                    pl.BlockSpec((bm, bk), lambda i, j, k: (i, k)),   # activations
                    pl.BlockSpec((bk, bn), lambda i, j, k: (k, j)),   # weights
                    pl.BlockSpec((1, bn), lambda i, j, k: (0, j)),    # bias
                ],
                out_specs=pl.BlockSpec((bm, bn), lambda i, j, k: (i, j)),
                scratch_shapes=[pltpu.VMEM((bm, bn), jnp.float32)],
            ),
            compiler_params=pltpu.CompilerParams(
                dimension_semantics=("parallel", "parallel", "arbitrary")),
        )(x2d, w, b2d)

    return out2d.reshape(B, S, I)       # free reshape, already row-major (B,S,I)


# ----------------------------------------------------------------------------
# Reference + demo
# ----------------------------------------------------------------------------
def _reference(hidden_states, w, b):
    # f32 reference on the same (bf16-quantized) values.
    y = jnp.dot(hidden_states.astype(jnp.float32), w.astype(jnp.float32),
                precision=jax.lax.Precision.HIGHEST) + b.astype(jnp.float32)
    return _gelu_tanh(y)


if __name__ == "__main__":
    # Small BertIntermediate-consistent config: hidden=32, intermediate=4*32=128.
    B, S, H, I = 2, 8, 32, 128

    key = jax.random.PRNGKey(0)
    k1, k2, k3 = jax.random.split(key, 3)

    # bf16 inputs/weights: exercises the native MXU bf16 x bf16 -> f32 path.
    x = jax.random.normal(k1, (B, S, H), jnp.float32).astype(jnp.bfloat16)
    w = (0.02 * jax.random.normal(k2, (H, I), jnp.float32)).astype(jnp.bfloat16)
    b = (0.02 * jax.random.normal(k3, (I,), jnp.float32)).astype(jnp.bfloat16)

    out = bert_intermediate(x, w, b)
    jax.block_until_ready(out)

    ref = _reference(x, w, b)
    assert out.shape == (B, S, I)
    err = jnp.max(jnp.abs(out.astype(jnp.float32) - ref))
    # bf16 output rounding bounds the error; matmul accumulation is f32 in both.
    assert err < 5e-3, f"max abs err {err}"

    print("KERNEL_OK")
</pallas_src>

<mosaic_0001>
module attributes {stable_mosaic.version = 11 : i64} {
  func.func @_kernel_single_k(%arg0: i32, %arg1: i32, %arg2: memref<16x32xbf16, #tpu.memory_space<vmem>>, %arg3: memref<32x128xbf16, #tpu.memory_space<vmem>>, %arg4: memref<1x128xbf16, #tpu.memory_space<vmem>>, %arg5: memref<16x128xbf16, #tpu.memory_space<vmem>>) attributes {dimension_semantics = [#tpu.dimension_semantics<parallel>, #tpu.dimension_semantics<parallel>], iteration_bounds = array<i64: 1, 1>, scalar_prefetch = 0 : i64, scratch_operands = 0 : i64, tpu.core_type = #tpu.core_type<tc>, window_params = [{transform_indices = @transform_0, window_bounds = array<i64: 16, 32>}, {transform_indices = @transform_1, window_bounds = array<i64: 32, 128>}, {transform_indices = @transform_2, window_bounds = array<i64: 1, 128>}, {transform_indices = @transform_3, window_bounds = array<i64: 16, 128>}]} {
    %c0 = arith.constant 0 : index
    %c0_0 = arith.constant 0 : index
    %0 = vector.load %arg2[%c0, %c0_0] : memref<16x32xbf16, #tpu.memory_space<vmem>>, vector<16x32xbf16>
    %c0_1 = arith.constant 0 : index
    %c0_2 = arith.constant 0 : index
    %1 = vector.load %arg3[%c0_1, %c0_2] : memref<32x128xbf16, #tpu.memory_space<vmem>>, vector<32x128xbf16>
    %cst = arith.constant dense<0.000000e+00> : vector<16x128xf32>
    %2 = tpu.matmul %0, %1, %cst {dimension_numbers = #tpu.dot_dimension_numbers<[1], [0], [0], [1], [0, 0, 1, 1], [], []>} : vector<16x32xbf16>, vector<32x128xbf16>, vector<16x128xf32> -> vector<16x128xf32>
    %c0_3 = arith.constant 0 : index
    %c0_4 = arith.constant 0 : index
    %3 = vector.load %arg4[%c0_3, %c0_4] : memref<1x128xbf16, #tpu.memory_space<vmem>>, vector<1x128xbf16>
    %4 = arith.extf %3 : vector<1x128xbf16> to vector<1x128xf32>
    %5 = vector.broadcast %4 : vector<1x128xf32> to vector<16x128xf32>
    %6 = arith.addf %2, %5 : vector<16x128xf32>
    %cst_5 = arith.constant 5.000000e-01 : f32
    %7 = vector.broadcast %cst_5 : f32 to vector<16x128xf32>
    %8 = arith.mulf %7, %6 : vector<16x128xf32>
    %9 = arith.mulf %6, %6 : vector<16x128xf32>
    %10 = arith.mulf %9, %6 : vector<16x128xf32>
    %cst_6 = arith.constant 4.471500e-02 : f32
    %11 = vector.broadcast %cst_6 : f32 to vector<16x128xf32>
    %12 = arith.mulf %11, %10 : vector<16x128xf32>
    %13 = arith.addf %6, %12 : vector<16x128xf32>
    %cst_7 = arith.constant 0.797884583 : f32
    %14 = vector.broadcast %cst_7 : f32 to vector<16x128xf32>
    %15 = arith.mulf %14, %13 : vector<16x128xf32>
    %16 = math.tanh %15 : vector<16x128xf32>
    %cst_8 = arith.constant 1.000000e+00 : f32
    %17 = vector.broadcast %cst_8 : f32 to vector<16x128xf32>
    %18 = arith.addf %17, %16 : vector<16x128xf32>
    %19 = arith.mulf %8, %18 : vector<16x128xf32>
    %20 = arith.truncf %19 : vector<16x128xf32> to vector<16x128xbf16>
    %c0_9 = arith.constant 0 : index
    %c0_10 = arith.constant 0 : index
    %21 = vector.load %arg5[%c0_9, %c0_10] : memref<16x128xbf16, #tpu.memory_space<vmem>>, vector<16x128xbf16>
    tpu.vector_store %arg5[%c0_9, %c0_10], %20 {strides = array<i32>} : memref<16x128xbf16, #tpu.memory_space<vmem>>, vector<16x128xbf16>,
    return
  }
  func.func @transform_0(%arg0: i32, %arg1: i32) -> (i32, i32) {
    %c0_i32 = arith.constant 0 : i32
    %c0_i32_0 = arith.constant 0 : i32
    return %arg0, %c0_i32 : i32, i32
  }
  func.func @transform_1(%arg0: i32, %arg1: i32) -> (i32, i32) {
    %c0_i32 = arith.constant 0 : i32
    %c0_i32_0 = arith.constant 0 : i32
    return %c0_i32, %arg1 : i32, i32
  }
  func.func @transform_2(%arg0: i32, %arg1: i32) -> (i32, i32) {
    %c0_i32 = arith.constant 0 : i32
    %c0_i32_0 = arith.constant 0 : i32
    return %c0_i32, %arg1 : i32, i32
  }
  func.func @transform_3(%arg0: i32, %arg1: i32) -> (i32, i32) {
    %c0_i32 = arith.constant 0 : i32
    return %arg0, %arg1 : i32, i32
  }
}

</mosaic_0001>

<bundles_post_ra>
// kernel: tpu_custom_call.1
= control target key start
LH: loop header
LB: loop body
LE: loop exit
PB: predicated region body
PF: predicated region fallthrough
CT: control target
= control target key end

     0   :  { %8 = vsyncpa [#allocation3], 0  ;;  %s349_s0 = inlined_call_operand.hbm [shape: bf16[16,32], index: 0, kind: input, shape index: {}]   ;;  %s350_s1 = inlined_call_operand.hbm [shape: bf16[32,128], index: 1, kind: input, shape index: {}]   ;;  %s351_s2 = inlined_call_operand.vmem [shape: bf16[1,128], index: 2, kind: input, shape index: {}]   ;;  %s352_s3 = inlined_call_operand.hbm [shape: bf16[16,128], index: 3, kind: output, shape index: {}]  }
   0x1   :  { %9 = vsyncpa [#allocation6], 0 }
   0x2   :  { %10 = vsyncpa [#allocation4], 0  ;;  %s274_s12 = smov [#allocation2]   ;;  %s202_s16 = scalar_lea.hbm %s349_s0, 128 }
   0x3   :  { %s16_s13 = sshll.u32 %s274_s12, 4  ;;  %p203_p0 = scmp.ne.s32.totalorder %s349_s0, %s202_s16  ;;  %s17_s13 = int_to_ptr.vmem [resolvable:$true] %s16_s13 }
   0x4   :  { %p206_p1 = scmp.lt.u32.totalorder %s202_s16, %s349_s0 }
   0x6   :  { %p208_p2 = pnand %p206_p1, %p203_p0 }
   0x8   :  { %211 = shalt.err (!%p208_p2)
}
   0x9   :  { %s212_s21 = scalar_lea.vmem %s17_s13, 128  ;;  %p217_p4 = scmp.lt.s32.totalorder %s17_s13, %s17_s13 }
   0xa   :  { %p213_p3 = scmp.ne.s32.totalorder %s17_s13, %s212_s21  ;;  %p218_p5 = scmp.lt.s32.totalorder %s212_s21, %s212_s21 }
   0xc   :  { %p219_p6 = por %p218_p5, %p217_p4 }
   0xe   :  { %p220_p7 = pnand %p219_p6, %p213_p3 }
  0x10   :  { %223 = shalt.err (!%p220_p7)
}
  0x11   :  { %s275_s22 = smov 64   ;;  %s276_s23 = smov 4  }
  0x12   :  { %22 = dma.hbm_to_vmem [thread:$0]  %s349_s0, 128, %s17_s13, [#allocation3], %s275_s22, %s275_s22, %s276_s23  }
  0x13   :  { %s277_s26 = smov [#allocation5]   ;;  %s224_s30 = scalar_lea.hbm %s350_s1, 256 }
  0x14   :  { %s28_s27 = sshll.u32 %s277_s26, 4  ;;  %p225_p8 = scmp.ne.s32.totalorder %s350_s1, %s224_s30  ;;  %s29_s27 = int_to_ptr.vmem [resolvable:$true] %s28_s27 }
  0x15   :  { %p228_p9 = scmp.lt.u32.totalorder %s224_s30, %s350_s1 }
  0x17   :  { %p230_p10 = pnand %p228_p9, %p225_p8 }
  0x19   :  { %233 = shalt.err (!%p230_p10)
}
  0x1a   :  { %s234_s8 = scalar_lea.vmem %s29_s27, 256  ;;  %p239_p12 = scmp.lt.s32.totalorder %s29_s27, %s29_s27 }
  0x1b   :  { %p235_p11 = scmp.ne.s32.totalorder %s29_s27, %s234_s8  ;;  %p240_p13 = scmp.lt.s32.totalorder %s234_s8, %s234_s8 }
  0x1d   :  { %p241_p0 = por %p240_p13, %p239_p12 }
  0x1f   :  { %p242_p1 = pnand %p241_p0, %p235_p11 }
  0x21   :  { %245 = shalt.err (!%p242_p1)
}
  0x22   :  { %34 = dma.hbm_to_vmem [thread:$0]  %s350_s1, 256, %s29_s27, [#allocation6], %s275_s22, %s275_s22, %s276_s23  }
  0x23   :  { %268 = dma.done.wait [#allocation3], 128  }
  0x24   :  { %269 = vsyncadd [#allocation3], 4294967168 }
  0x25   :  { %270 = dma.done.wait [#allocation6], 256  }
  0x26   :  { %271 = vsyncadd [#allocation6], 4294967040  ;;  %v278_v0 = vmov 0.0   ;;  %vm279_vm0 = vmmov 0   ;;  %v195_v1 = vld [vmem:[#allocation5] sm:$0xff]   ;;  %v196_v2 = vld [vmem:[#allocation5 + $0x8] sm:$0xff]   ;;  %v52_v4 = vlaneseq }
  0x27   :  { %180 = vmatprep.subr.bf16.mxu0 %v278_v0  ;;  %184 = vmatprep.mubr.msk.bf16.mxu0 %vm279_vm0, %v278_v0  ;;  %v197_v3 = vld [vmem:[#allocation2] sm:$0xff]   ;;  %vm73_vm1 = vcmask 261120  }
  0x28   :  { %181 = vmatpush3.bf16.msra.mxu0 %v195_v1  ;;  %v53_v5 = vshrl.u32 %v52_v4, 7  ;;  %v50_v6 = vld [vmem:[%s351_s2] sm:$0x1]  ;;  %s280_s2 = smov [#allocation7]  }
  0x29   :  { %182 = vmatprep.subr.bf16.mxu0 %v278_v0  ;;  %v51_v7 = vunpack.c.l.bf16 %v50_v6  ;;  %s151_s11 = sshll.u32 %s280_s2, 4  ;;  %s152_s11 = int_to_ptr.vmem [resolvable:$true] %s151_s11 }
  0x2a   :  { %v54_v8 = vsub.s32 0, %v53_v5  ;;  %s246_s12 = scalar_lea.vmem %s152_s11, 128  ;;  %p251_p3 = scmp.lt.s32.totalorder %s152_s11, %s152_s11 }
  0x2b   :  { %p247_p2 = scmp.ne.s32.totalorder %s152_s11, %s246_s12  ;;  %p252_p4 = scmp.lt.s32.totalorder %s246_s12, %s246_s12 }
  0x2c   :  { %183 = vmatpush3.bf16.msra.mxu0 %v196_v2  ;;  %v55_v9 = vrot.slane %v51_v7, %v54_v8 }
  0x2d   :  { %p253_p5 = por %p252_p4, %p251_p3 }
  0x2f   :  { %185 = vmatmul.mubr.msk.bf16.vlgmr.msra.gmra.mrb[0].mxu0 %vm73_vm1, %v197_v3  ;;  %p254_p6 = pnand %p253_p5, %p247_p2 }
 0x102   :  { %v111_v10 = vpop.f32.mrb[0].mxu0 }
 0x103   :  { %v112_v11 = vadd.f32 %v111_v10, %v55_v9  ;;  %v186_v12 = vpop.f32.mrb[1].mxu0 }
 0x104   :  { %v114_v13 = vpop.f32.mrb[2].mxu0 }
 0x105   :  { %v120_v14 = vmul.f32 %v112_v11, %v112_v11  ;;  %v115_v15 = vadd.f32 %v114_v13, %v55_v9  ;;  %v187_v16 = vpop.f32.mrb[3].mxu0  ;;  %v118_v29 = vmul.f32 0.5, %v112_v11 }
 0x107   :  { %v122_v17 = vmul.f32 %v120_v14, %v112_v11  ;;  %v121_v18 = vmul.f32 %v115_v15, %v115_v15  ;;  %v119_v30 = vmul.f32 0.5, %v115_v15 }
 0x109   :  { %v124_v19 = vmul.f32 0.044715, %v122_v17  ;;  %v123_v20 = vmul.f32 %v121_v18, %v115_v15 }
 0x10b   :  { %v126_v21 = vadd.f32 %v124_v19, %v112_v11  ;;  %v125_v22 = vmul.f32 0.044715, %v123_v20 }
 0x10d   :  { %v128_v23 = vmul.f32 0.7978846, %v126_v21  ;;  %v127_v24 = vadd.f32 %v125_v22, %v115_v15 }
 0x10f   :  { %198 = vtanh.f32 %v128_v23  ;;  %v129_v25 = vmul.f32 0.7978846, %v127_v24 }
 0x111   :  { %200 = vtanh.f32 %v129_v25 }
 0x119   :  { %v199_v26 = vpop.eup %198 }
 0x11a   :  { %v132_v27 = vadd.f32 1.0, %v199_v26 }
 0x11b   :  { %v201_v28 = vpop.eup %200 }
 0x11c   :  { %v133_v31 = vadd.f32 1.0, %v201_v28  ;;  %v134_v32 = vmul.f32 %v132_v27, %v118_v29 }
 0x11e   :  { %v135_v33 = vmul.f32 %v133_v31, %v119_v30 }
 0x120   :  { %v175_v34 = vpack.c.bf16 %v135_v33, %v134_v32 }
 0x122   :  { %176 = vst [vmem:[#allocation7] sm:$0xff] %v175_v34  }
 0x123   :  { %257 = shalt.err (!%p254_p6)
}
 0x124   :  { %s258_s15 = scalar_lea.hbm %s352_s3, 128 }
 0x125   :  { %p259_p7 = scmp.ne.s32.totalorder %s352_s3, %s258_s15  ;;  %p262_p8 = scmp.lt.u32.totalorder %s258_s15, %s352_s3 }
 0x127   :  { %p264_p9 = pnand %p262_p8, %p259_p7 }
 0x129   :  { %267 = shalt.err (!%p264_p9)
}
 0x12a   :  { %157 = dma.vmem_to_hbm [thread:$0]  %s152_s11, 128, %s352_s3, [#allocation4], %s275_s22, %s275_s22, %s276_s23  }
 0x12b   :  { %272 = dma.done.wait [#allocation4], 128  }
 0x12c   :  { %273 = vsyncadd [#allocation4], 4294967168 }
 0x12d   :  { %161 = vsyncpa [#allocation3], 1 }
 0x12e   :  { %162 = vsyncpa [#allocation6], 1 }
 0x12f   :  { %163 = vsyncpa [#allocation4], 1 }

</bundles_post_ra>
